<compile_context>
chip_gen: v7x
topology: tpu7x:2x2x1
jax: 0.10.0
libtpu: 0.0.40
codegen_flags: <defaults>
</compile_context>

<pallas_src>
import functools

import jax
import jax.numpy as jnp
from jax.experimental import pallas as pl
from jax.experimental.pallas import tpu as pltpu


def _round_up(x, m):
    return ((x + m - 1) // m) * m


def _vmem_capacity():
    try:
        return int(pltpu.get_tpu_info().vmem_capacity_bytes)
    except Exception:
        return 64 << 20          # conservative: v7x has 64 MiB per TensorCore


def _pick_tile(B, in_row_bytes, out_row_bytes, sub, vmem_cap):
    """Rows per grid step, sized from a per-generation VMEM budget."""
    budget = min(vmem_cap // 2, 48 << 20)            # leave headroom
    per_row = 2 * in_row_bytes + 2 * out_row_bytes   # double-buffered in + out
    tb = max(sub, budget // max(per_row, 1))
    # Prefer >= 8 grid steps when the batch allows it (megacore + pipelining).
    tb = min(tb, max(sub, _round_up(pl.cdiv(B, 8), sub)))
    tb = max(sub, (tb // sub) * sub)
    if tb >= B:
        tb = B                   # single full-extent block is always legal
    return tb


def fm_kernel(x_ref, sel_ref, o_ref, *, reduce_sum):
    # x_ref:   (tb, F*E)  lane-dense input tile
    # sel_ref: (F*E, E)   0/1 field-selector matrix, SEL[f*E + e, e] = 1
    # o_ref:   (tb, 1) if reduce_sum else (tb, E)
    sel = sel_ref[...]
    x = x_ref[...].astype(sel.dtype)
    # Field sums on the MXU with f32 accumulation:
    #   s[r, e]  = sum_f x[r, f, e]         (square_of_sum before squaring)
    #   sq[r, e] = sum_f x[r, f, e] ** 2    (sum_of_square)
    s = jnp.dot(x, sel, preferred_element_type=jnp.float32)
    sq = jnp.dot(x * x, sel, preferred_element_type=jnp.float32)
    ix = s * s - sq                                   # (tb, E), f32
    if reduce_sum:
        ix = jnp.sum(ix, axis=1, keepdims=True)       # (tb, 1)
    o_ref[...] = (0.5 * ix).astype(o_ref.dtype)


def factorization_machine(x, *, reduce_sum=True, tb=None):
    """x: (B, num_fields, embed_dim) -> (B, 1) if reduce_sum else (B, embed_dim)."""
    B, F, E = x.shape
    FE = F * E
    out_cols = 1 if reduce_sum else E
    out_dtype = x.dtype

    # Compute / selector dtype: keep bf16 native on the MXU, otherwise f32.
    cdtype = x.dtype if x.dtype in (jnp.float32, jnp.bfloat16) else jnp.float32
    sel = (jnp.arange(FE)[:, None] % E == jnp.arange(E)[None, :]).astype(cdtype)

    # Lane-dense 2-D view of the input (row-major collapse, no HBM copy).
    x2d = x.reshape(B, FE)

    itemsize = jnp.dtype(x.dtype).itemsize
    out_itemsize = jnp.dtype(out_dtype).itemsize
    sub = 8 * max(1, 4 // itemsize)      # sublane multiple: 8 f32 / 16 bf16 / 32 int8
    in_row_bytes = _round_up(FE, 128) * itemsize            # VMEM bytes per tile row
    out_row_bytes = _round_up(out_cols, 128) * out_itemsize

    vmem_cap = _vmem_capacity()
    if tb is None:
        tb = _pick_tile(B, in_row_bytes, out_row_bytes, sub, vmem_cap)
    else:
        tb = B if tb >= B else max(sub, (tb // sub) * sub)

    n_tiles = pl.cdiv(B, tb)
    B_pad = n_tiles * tb                 # only the (tiny) output is padded

    sel_bytes = _round_up(FE, 8) * _round_up(E, 128) * jnp.dtype(cdtype).itemsize
    vmem_need = 2 * tb * in_row_bytes + 2 * tb * out_row_bytes + sel_bytes + (4 << 20)
    vmem_limit = min(int(vmem_cap * 0.9), max(vmem_need, 32 << 20))

    flops = 4 * B * FE * E + 4 * B * FE
    bytes_accessed = (B * FE * itemsize + B * out_cols * out_itemsize
                      + FE * E * jnp.dtype(cdtype).itemsize)
    cost = pl.CostEstimate(flops=flops, transcendentals=0,
                           bytes_accessed=bytes_accessed)

    kernel = functools.partial(fm_kernel, reduce_sum=reduce_sum)

    out = pl.pallas_call(
        kernel,
        out_shape=jax.ShapeDtypeStruct((B_pad, out_cols), out_dtype),
        grid=(n_tiles,),
        in_specs=[
            pl.BlockSpec((tb, FE), lambda b: (b, 0)),
            pl.BlockSpec((FE, E), lambda b: (0, 0)),   # constant block -> fetched once
        ],
        out_specs=pl.BlockSpec((tb, out_cols), lambda b: (b, 0)),
        compiler_params=pltpu.CompilerParams(
            dimension_semantics=("parallel",),
            vmem_limit_bytes=vmem_limit,
        ),
        cost_estimate=cost,
    )(x2d, sel)

    return out[:B]


def factorization_machine_ref(x, reduce_sum=True):
    """Pure-JAX reference mirroring the PyTorch forward."""
    square_of_sum = jnp.sum(x, axis=1) ** 2
    sum_of_square = jnp.sum(x ** 2, axis=1)
    ix = square_of_sum - sum_of_square
    if reduce_sum:
        ix = jnp.sum(ix, axis=1, keepdims=True)
    return 0.5 * ix


if __name__ == "__main__":
    B, F, E = 16, 8, 32   # batch, num_fields, embed_dim

    key = jax.random.PRNGKey(0)
    x = jax.random.normal(key, (B, F, E), jnp.float32)

    # reduce_sum=True (module default)
    out = factorization_machine(x, reduce_sum=True)
    out = jax.block_until_ready(out)
    ref = factorization_machine_ref(x, reduce_sum=True)
    assert out.shape == (B, 1)
    assert jnp.allclose(out, ref, atol=1e-4, rtol=1e-4)

    # reduce_sum=False path
    out2 = factorization_machine(x, reduce_sum=False)
    out2 = jax.block_until_ready(out2)
    ref2 = factorization_machine_ref(x, reduce_sum=False)
    assert out2.shape == (B, E)
    assert jnp.allclose(out2, ref2, atol=1e-4, rtol=1e-4)

    # Ragged batch (B % tb != 0): exercises the no-pad / ragged-last-block path.
    B3 = 19
    x3 = jax.random.normal(jax.random.PRNGKey(0), (B3, F, E), jnp.float32)
    out3 = jax.block_until_ready(factorization_machine(x3, reduce_sum=True))
    ref3 = factorization_machine_ref(x3, reduce_sum=True)
    assert out3.shape == (B3, 1)
    assert jnp.allclose(out3, ref3, atol=1e-4, rtol=1e-4)

    print("KERNEL_OK")
</pallas_src>

<mosaic_0001>
module attributes {stable_mosaic.version = 11 : i64} {
  func.func @fm_kernel(%arg0: i32, %arg1: memref<8x256xf32, #tpu.memory_space<vmem>>, %arg2: memref<256x32xf32, #tpu.memory_space<vmem>>, %arg3: memref<8x1xf32, #tpu.memory_space<vmem>>) attributes {dimension_semantics = [#tpu.dimension_semantics<parallel>], iteration_bounds = array<i64: 2>, scalar_prefetch = 0 : i64, scratch_operands = 0 : i64, tpu.core_type = #tpu.core_type<tc>, window_params = [{transform_indices = @transform_0, window_bounds = array<i64: 8, 256>}, {pipeline_mode = #tpu.pipeline_mode<synchronous>, transform_indices = @transform_1, window_bounds = array<i64: 256, 32>}, {transform_indices = @transform_2, window_bounds = array<i64: 8, 1>}]} {
    %c0 = arith.constant 0 : index
    %c0_0 = arith.constant 0 : index
    %0 = vector.load %arg2[%c0, %c0_0] : memref<256x32xf32, #tpu.memory_space<vmem>>, vector<256x32xf32>
    %c0_1 = arith.constant 0 : index
    %c0_2 = arith.constant 0 : index
    %1 = vector.load %arg1[%c0_1, %c0_2] : memref<8x256xf32, #tpu.memory_space<vmem>>, vector<8x256xf32>
    %cst = arith.constant dense<0.000000e+00> : vector<8x32xf32>
    %2 = tpu.matmul %1, %0, %cst {dimension_numbers = #tpu.dot_dimension_numbers<[1], [0], [0], [1], [0, 0, 1, 1], [], []>} : vector<8x256xf32>, vector<256x32xf32>, vector<8x32xf32> -> vector<8x32xf32>
    %3 = arith.mulf %1, %1 : vector<8x256xf32>
    %cst_3 = arith.constant dense<0.000000e+00> : vector<8x32xf32>
    %4 = tpu.matmul %3, %0, %cst_3 {dimension_numbers = #tpu.dot_dimension_numbers<[1], [0], [0], [1], [0, 0, 1, 1], [], []>} : vector<8x256xf32>, vector<256x32xf32>, vector<8x32xf32> -> vector<8x32xf32>
    %5 = arith.mulf %2, %2 : vector<8x32xf32>
    %6 = arith.subf %5, %4 : vector<8x32xf32>
    %cst_4 = arith.constant dense<0.000000e+00> : vector<8xf32>
    %7 = vector.multi_reduction <add>, %6, %cst_4 [1] : vector<8x32xf32> to vector<8xf32>
    %8 = vector.shape_cast %7 : vector<8xf32> to vector<8x1xf32>
    %cst_5 = arith.constant 5.000000e-01 : f32
    %9 = vector.broadcast %cst_5 : f32 to vector<8x1xf32>
    %10 = arith.mulf %9, %8 : vector<8x1xf32>
    %c0_6 = arith.constant 0 : index
    %c0_7 = arith.constant 0 : index
    %11 = vector.load %arg3[%c0_6, %c0_7] : memref<8x1xf32, #tpu.memory_space<vmem>>, vector<8x1xf32>
    tpu.vector_store %arg3[%c0_6, %c0_7], %10 {strides = array<i32>} : memref<8x1xf32, #tpu.memory_space<vmem>>, vector<8x1xf32>,
    return
  }
  func.func @transform_0(%arg0: i32) -> (i32, i32) {
    %c0_i32 = arith.constant 0 : i32
    %c0_i32_0 = arith.constant 0 : i32
    return %arg0, %c0_i32 : i32, i32
  }
  func.func @transform_1(%arg0: i32) -> (i32, i32) {
    %c0_i32 = arith.constant 0 : i32
    %c0_i32_0 = arith.constant 0 : i32
    %c0_i32_1 = arith.constant 0 : i32
    return %c0_i32, %c0_i32_0 : i32, i32
  }
  func.func @transform_2(%arg0: i32) -> (i32, i32) {
    %c0_i32 = arith.constant 0 : i32
    %c0_i32_0 = arith.constant 0 : i32
    return %arg0, %c0_i32 : i32, i32
  }
}

</mosaic_0001>

<bundles_post_ra>
// kernel: tpu_custom_call.1
= control target key start
LH: loop header
LB: loop body
LE: loop exit
PB: predicated region body
PF: predicated region fallthrough
CT: control target
= control target key end

     0   :  { %s556_s9 = smov 0   ;;  %s677_s0 = inlined_call_operand.vmem [shape: f32[16,256], index: 0, kind: input, shape index: {}]   ;;  %s678_s1 = inlined_call_operand.vmem [shape: f32[256,32], index: 1, kind: input, shape index: {}]   ;;  %s679_s2 = inlined_call_operand.vmem [shape: f32[16,1], index: 2, kind: output, shape index: {}]  }
   0x1 LB: > { %s380_s10 = sadd.s32 4294967295, %s539_s9   ;;  %p384_p0 = scmp.ge.s32.totalorder %s539_s9, 1  ;;  %s539_s9 = sphi %s556_s9, %s12_s9  }
   0x2   : > { %p112_p1 = scmp.lt.s32.totalorder %s539_s9, 3 }
   0x4   : > { %p113_p2 = pnand %p384_p0, %p112_p1 }
   0x5   : > { %v158_v0 = vld [vmem:[%s678_s1 + $0x80] sm:$0xff] (!%p113_p2)  ;;  %v159_v1 = vld [vmem:[%s678_s1 + $0x88] sm:$0xff] (!%p113_p2)  ;;  %p133_p3 = scmp.lt.s32.totalorder (!%p113_p2), %s380_s10, 1  ;;  %v160_v5 = vld [vmem:[%s678_s1 + $0x90] sm:$0xff] (!%p113_p2)  ;;  %vm320_vm0 = vcmask (!%p113_p2), 261120   ;;  %vm325_vm1 = vcmask (!%p113_p2), 7168  }
   0x6   : > { %116 = sbr.rel (%p113_p2) target bundleno = 405 (0x195), region = 28  ;;  %v142_v2 = vld [vmem:[%s678_s1] sm:$0xff] (!%p113_p2)  ;;  %v461_v3 = vpack.c.bf16 (!%p113_p2), %v159_v1, %v158_v0  ;;  %v143_v4 = vld [vmem:[%s678_s1 + $0x8] sm:$0xff] (!%p113_p2)  ;;  %v161_v6 = vld [vmem:[%s678_s1 + $0x98] sm:$0xff] (!%p113_p2) }
   0x7   : > { %v463_v7 = vpack.c.bf16 (!%p113_p2), %v143_v4, %v142_v2  ;;  %v465_v8 = vpack.c.bf16 (!%p113_p2), %v161_v6, %v160_v5  ;;  %v144_v9 = vld [vmem:[%s678_s1 + $0x10] sm:$0xff] (!%p113_p2)  ;;  %v145_v10 = vld [vmem:[%s678_s1 + $0x18] sm:$0xff] (!%p113_p2)  ;;  %v162_v11 = vld [vmem:[%s678_s1 + $0xa0] sm:$0xff] (!%p113_p2) }
   0x8   : > { %462 = vmatprep.subr.bf16.mxu0 (!%p113_p2), %v461_v3  ;;  %494 = vmatprep.subr.bf16.mxu1 (!%p113_p2), %v461_v3  ;;  %v163_v12 = vld [vmem:[%s678_s1 + $0xa8] sm:$0xff] (!%p113_p2)  ;;  %v467_v13 = vpack.c.bf16 (!%p113_p2), %v145_v10, %v144_v9  ;;  %v146_v15 = vld [vmem:[%s678_s1 + $0x20] sm:$0xff] (!%p113_p2)  ;;  %v164_v17 = vld [vmem:[%s678_s1 + $0xb0] sm:$0xff] (!%p113_p2) }
   0x9   : > { %464 = vmatpush3.bf16.msra.mxu0 (!%p113_p2), %v463_v7  ;;  %496 = vmatpush3.bf16.msra.mxu1 (!%p113_p2), %v463_v7  ;;  %v469_v14 = vpack.c.bf16 (!%p113_p2), %v163_v12, %v162_v11  ;;  %v147_v16 = vld [vmem:[%s678_s1 + $0x28] sm:$0xff] (!%p113_p2)  ;;  %v165_v18 = vld [vmem:[%s678_s1 + $0xb8] sm:$0xff] (!%p113_p2)  ;;  %v148_v21 = vld [vmem:[%s678_s1 + $0x30] sm:$0xff] (!%p113_p2) }
   0xa   : > { %466 = vmatprep.subr.bf16.mxu0 (!%p113_p2), %v465_v8  ;;  %498 = vmatprep.subr.bf16.mxu1 (!%p113_p2), %v465_v8  ;;  %v471_v19 = vpack.c.bf16 (!%p113_p2), %v147_v16, %v146_v15  ;;  %v473_v20 = vpack.c.bf16 (!%p113_p2), %v165_v18, %v164_v17  ;;  %v149_v22 = vld [vmem:[%s678_s1 + $0x38] sm:$0xff] (!%p113_p2)  ;;  %v166_v23 = vld [vmem:[%s678_s1 + $0xc0] sm:$0xff] (!%p113_p2)  ;;  %v167_v24 = vld [vmem:[%s678_s1 + $0xc8] sm:$0xff] (!%p113_p2) }
   0xb   : > { %v475_v27 = vpack.c.bf16 (!%p113_p2), %v149_v22, %v148_v21  ;;  %v477_v28 = vpack.c.bf16 (!%p113_p2), %v167_v24, %v166_v23  ;;  %v150_v29 = vld [vmem:[%s678_s1 + $0x40] sm:$0xff] (!%p113_p2)  ;;  %v151_v30 = vld [vmem:[%s678_s1 + $0x48] sm:$0xff] (!%p113_p2)  ;;  %v168_v31 = vld [vmem:[%s678_s1 + $0xd0] sm:$0xff] (!%p113_p2) }
   0xc   : > { %v169_v32 = vld [vmem:[%s678_s1 + $0xd8] sm:$0xff] (!%p113_p2)  ;;  %v479_v33 = vpack.c.bf16 (!%p113_p2), %v151_v30, %v150_v29  ;;  %v152_v35 = vld [vmem:[%s678_s1 + $0x50] sm:$0xff] (!%p113_p2)  ;;  %v170_v37 = vld [vmem:[%s678_s1 + $0xe0] sm:$0xff] (!%p113_p2) }
   0xd   : > { %s681_s10 = smov (!%p133_p3, %s380_s10), 1  ;;  %468 = vmatpush3.bf16.msra.mxu0 %v467_v13  ;;  %500 = vmatpush3.bf16.msra.mxu1 %v467_v13  ;;  %v481_v34 = vpack.c.bf16 %v169_v32, %v168_v31  ;;  %v153_v36 = vld [vmem:[%s678_s1 + $0x58] sm:$0xff]  ;;  %v171_v38 = vld [vmem:[%s678_s1 + $0xe8] sm:$0xff]  ;;  %v154_v41 = vld [vmem:[%s678_s1 + $0x60] sm:$0xff] }
   0xe   : > { %s390_s3 = sshll.u32 %s681_s10, 4  ;;  %470 = vmatprep.subr.bf16.mxu0 %v469_v14  ;;  %502 = vmatprep.subr.bf16.mxu1 %v469_v14  ;;  %v483_v39 = vpack.c.bf16 %v153_v36, %v152_v35  ;;  %v485_v40 = vpack.c.bf16 %v171_v38, %v170_v37  ;;  %v155_v42 = vld [vmem:[%s678_s1 + $0x68] sm:$0xff]  ;;  %v172_v43 = vld [vmem:[%s678_s1 + $0xf0] sm:$0xff]  ;;  %v173_v44 = vld [vmem:[%s678_s1 + $0xf8] sm:$0xff] }
   0xf   : > { %s612_s16 = scalar_lea.vmem %s677_s0, %s390_s3  ;;  %v487_v45 = vpack.c.bf16 %v155_v42, %v154_v41  ;;  %v489_v46 = vpack.c.bf16 %v173_v44, %v172_v43  ;;  %v156_v47 = vld [vmem:[%s678_s1 + $0x70] sm:$0xff]  ;;  %v157_v48 = vld [vmem:[%s678_s1 + $0x78] sm:$0xff] }
  0x10   : > { %v175_v25 = vld [vmem:[%s612_s16 + $0x8] sm:$0xff]  ;;  %v491_v49 = vpack.c.bf16 %v157_v48, %v156_v47  ;;  %v174_v50 = vld [vmem:[%s612_s16] sm:$0xff]  ;;  %s387_s16 = sshll.u32 %s681_s10, 3 }
  0x11   : > { %240 = vmatprep.mubr.f32.mxu0 %v175_v25  ;;  %v247_v26 = vmul.f32 %v175_v25, %v175_v25  ;;  %472 = vmatpush3.bf16.msra.mxu0 %v471_v19  ;;  %v246_v51 = vmul.f32 %v174_v50, %v174_v50  ;;  %s141_s30 = scalar_lea.vmem %s679_s2, %s387_s16 }
  0x12   : > { %504 = vmatpush3.bf16.msra.mxu1 %v471_v19  ;;  %474 = vmatprep.subr.bf16.mxu0 %v473_v20 }
  0x13   : > { %506 = vmatprep.subr.bf16.mxu1 %v473_v20  ;;  %312 = vmatprep.mubr.f32.mxu1 %v247_v26 }
  0x15   : > { %476 = vmatpush3.bf16.msra.mxu0 %v475_v27 }
  0x16   : > { %508 = vmatpush3.bf16.msra.mxu1 %v475_v27  ;;  %478 = vmatprep.subr.bf16.mxu0 %v477_v28 }
  0x17   : > { %510 = vmatprep.subr.bf16.mxu1 %v477_v28 }
  0x19   : > { %480 = vmatpush3.bf16.msra.mxu0 %v479_v33 }
  0x1a   : > { %512 = vmatpush3.bf16.msra.mxu1 %v479_v33  ;;  %482 = vmatprep.subr.bf16.mxu0 %v481_v34 }
  0x1b   : > { %514 = vmatprep.subr.bf16.mxu1 %v481_v34 }
  0x1d   : > { %484 = vmatpush3.bf16.msra.mxu0 %v483_v39 }
  0x1e   : > { %516 = vmatpush3.bf16.msra.mxu1 %v483_v39  ;;  %486 = vmatprep.subr.bf16.mxu0 %v485_v40 }
  0x1f   : > { %518 = vmatprep.subr.bf16.mxu1 %v485_v40 }
  0x21   : > { %488 = vmatpush3.bf16.msra.mxu0 %v487_v45 }
  0x22   : > { %520 = vmatpush3.bf16.msra.mxu1 %v487_v45  ;;  %490 = vmatprep.subr.bf16.mxu0 %v489_v46 }
  0x23   : > { %522 = vmatprep.subr.bf16.mxu1 %v489_v46 }
  0x25   : > { %492 = vmatpush3.bf16.msra.mxu0 %v491_v49 }
  0x26   : > { %524 = vmatpush3.bf16.msra.mxu1 %v491_v49 }
  0x28   : > { %241 = vmatmul.mubr.f32.vlgmr.msra.gmra.mrb[0].mxu0 %v174_v50 }
  0x29   : > { %313 = vmatmul.mubr.f32.vlgmr.msra.gmra.mrb[0].mxu1 %v246_v51 }
  0xfb   : > { %v423_v52 = vpop.f32.mrb[0].mxu0 }
  0xfc   : > { %v458_v53 = vpop.f32.mrb[0].mxu1  ;;  %v424_v54 = vpop.f32.mrb[1].mxu0 }
  0xfd   : > { %v459_v55 = vpop.f32.mrb[1].mxu1  ;;  %v425_v56 = vadd.f32 %v424_v54, %v423_v52 }
  0xfe   : > { %v460_v57 = vadd.f32 %v459_v55, %v458_v53 }
  0xff   : > { %v318_v58 = vmul.f32 %v425_v56, %v425_v56 }
 0x101   : > { %v319_v59 = vsub.f32 %v318_v58, %v460_v57 }
 0x103   : > { %v321_v60 = vsel %vm320_vm0, %v319_v59, 0.0 }
 0x104   : > { %322 = vadd.xlane.f32.xlu0 %v321_v60 }
 0x191   : > { %v323_v61 = vpop.xlane.xlu0 %322 }
 0x192   : > { %v324_v62 = vmul.f32 0.5, %v323_v61 }
 0x194   : > { %326 = vst.msk [vmem:[%s141_s30] sm:$0xff] %vm325_vm1, %v324_v62 }
 0x195 PF: > { %s12_s9 = sadd.s32 1, %s539_s9  }
 0x196   : > { %p9_p4 = scmp.ge.s32.totalorder %s12_s9, 4  }
 0x198   :  { %11 = sbr.rel (!%p9_p4) target bundleno = 1 (0x1), region = 58 }

</bundles_post_ra>
